<compile_context>
chip_gen: v6e
topology: v6e:2x2x1
jax: 0.10.0
libtpu: 0.0.40
codegen_flags: <defaults>
</compile_context>

<pallas_src>
import math
import functools

import jax
import jax.numpy as jnp
from jax.experimental import pallas as pl
from jax.experimental.pallas import tpu as pltpu


def _round_up(n, m):
    return ((n + m - 1) // m) * m


# ---------------------------------------------------------------------------
# Kernel
# ---------------------------------------------------------------------------
def diffusion_fwd_kernel(
    x_ref,      # (TILE_B, D_PAD)           bf16
    t_ref,      # (TILE_B, 1)               f32
    w_in_ref,   # (D_PAD, H_PAD)            bf16
    wt1_ref,    # (2*HALF_PAD, T2_PAD)      bf16  rows: [sin half | cos half]
    wt2_ref,    # (T2_PAD, T_PAD)           bf16
    w1_ref,     # (H_PAD + T_PAD, H_PAD)    bf16  rows: [h | time_emb]
    w2_ref,     # (H_PAD, H_PAD)            bf16
    w3_ref,     # (H_PAD, H_PAD)            bf16
    wo_ref,     # (H_PAD, D_PAD)            bf16
    vec_ref,    # (14, W_MAX)               f32   packed row vectors
    o_ref,      # (TILE_B, D_PAD)           f32
    *, n_hidden,
):
    f32, bf16 = jnp.float32, jnp.bfloat16

    D_PAD, H_PAD = w_in_ref.shape
    HALF_PAD = wt1_ref.shape[0] // 2
    T2_PAD = wt1_ref.shape[1]
    T_PAD = wt2_ref.shape[1]

    # Packed constant row vectors (all zero-padded; see padding invariant).
    freqs = vec_ref[0:1, :HALF_PAD]
    b_in = vec_ref[1:2, :H_PAD]
    bt1 = vec_ref[2:3, :T2_PAD]
    bt2 = vec_ref[3:4, :T_PAD]
    b1, g1, be1 = vec_ref[4:5, :H_PAD], vec_ref[5:6, :H_PAD], vec_ref[6:7, :H_PAD]
    b2, g2, be2 = vec_ref[7:8, :H_PAD], vec_ref[8:9, :H_PAD], vec_ref[9:10, :H_PAD]
    b3, g3, be3 = vec_ref[10:11, :H_PAD], vec_ref[11:12, :H_PAD], vec_ref[12:13, :H_PAD]
    bo = vec_ref[13:14, :D_PAD]

    def silu(v):
        # sigmoid via EUP exp + approx reciprocal (keeps the divide off the VPU).
        return v * pl.reciprocal(1.0 + jnp.exp(-v), approx=True)

    def layer_norm(v, gamma, beta):
        # Padded lanes of v are exactly zero, so lane-sums over the padded
        # width equal sums over the n_hidden valid lanes (no iota/where mask).
        inv_n = 1.0 / float(n_hidden)
        mu = jnp.sum(v, axis=-1, keepdims=True) * inv_n
        ex2 = jnp.sum(v * v, axis=-1, keepdims=True) * inv_n
        var = jnp.maximum(ex2 - mu * mu, 0.0)
        return (v - mu) * jax.lax.rsqrt(var + 1e-5) * gamma + beta

    # ---- input projection (bf16 MXU, f32 accumulate) ------------------------
    h = jnp.dot(x_ref[...], w_in_ref[...], preferred_element_type=f32) + b_in

    # ---- sinusoidal timestep embedding (t broadcast across lanes in-kernel) -
    arg = t_ref[...] * freqs                               # (TILE_B, HALF_PAD)
    sincos = jnp.concatenate([jnp.sin(arg), jnp.cos(arg)], axis=-1)

    # ---- time MLP: cat(sin, cos) handled by one fused-K contraction ---------
    te = jnp.dot(sincos.astype(bf16), wt1_ref[...], preferred_element_type=f32) + bt1
    te = silu(te)
    te = jnp.dot(te.astype(bf16), wt2_ref[...], preferred_element_type=f32) + bt2

    # ---- Block 1 on cat(h, time_emb): single fused-K contraction ------------
    h_te = jnp.concatenate([h.astype(bf16), te.astype(bf16)], axis=-1)
    h1 = jnp.dot(h_te, w1_ref[...], preferred_element_type=f32) + b1
    h1 = silu(layer_norm(h1, g1, be1))
    # Dropout(0.1): identity in eval mode.

    # ---- Block 2 -------------------------------------------------------------
    h2 = jnp.dot(h1.astype(bf16), w2_ref[...], preferred_element_type=f32) + b2
    h2 = silu(layer_norm(h2, g2, be2))

    # ---- Block 3 -------------------------------------------------------------
    h3 = jnp.dot(h2.astype(bf16), w3_ref[...], preferred_element_type=f32) + b3
    h3 = silu(layer_norm(h3, g3, be3))

    # ---- output projection (kept f32; bf16 would halve the write traffic) ---
    o_ref[...] = (jnp.dot(h3.astype(bf16), wo_ref[...], preferred_element_type=f32)
                  + bo).astype(o_ref.dtype)


# ---------------------------------------------------------------------------
# Parameters
# ---------------------------------------------------------------------------
def init_params(key, window_size, feature_dim, hidden_dim, time_dim):
    """Unpadded params in (in_features, out_features) layout (== torch W.T)."""
    d_in = window_size * feature_dim
    ks = jax.random.split(key, 10)

    def w(k, shape, s=0.05):
        return jax.random.normal(k, shape, jnp.float32) * s

    return dict(
        w_in=w(ks[0], (d_in, hidden_dim)),
        b_in=w(ks[1], (hidden_dim,), 0.01),
        wt1=w(ks[2], (time_dim, 2 * time_dim)),
        bt1=w(ks[3], (2 * time_dim,), 0.01),
        wt2=w(ks[4], (2 * time_dim, time_dim)),
        bt2=w(ks[5], (time_dim,), 0.01),
        w1=w(ks[6], (hidden_dim + time_dim, hidden_dim)),
        b1=w(ks[7], (hidden_dim,), 0.01),
        g1=jnp.ones((hidden_dim,), jnp.float32),
        be1=jnp.zeros((hidden_dim,), jnp.float32),
        w2=w(ks[8], (hidden_dim, hidden_dim)),
        b2=jnp.zeros((hidden_dim,), jnp.float32),
        g2=jnp.ones((hidden_dim,), jnp.float32),
        be2=jnp.zeros((hidden_dim,), jnp.float32),
        w3=w(ks[9], (hidden_dim, hidden_dim)),
        b3=jnp.zeros((hidden_dim,), jnp.float32),
        g3=jnp.ones((hidden_dim,), jnp.float32),
        be3=jnp.zeros((hidden_dim,), jnp.float32),
        wo=w(jax.random.fold_in(key, 123), (hidden_dim, d_in)),
        bo=w(jax.random.fold_in(key, 456), (d_in,), 0.01),
    )


def prepare_params(params, *, window_size, feature_dim, hidden_dim, time_dim):
    """Pad / cast / pack weights ONCE (hoisted out of the per-call wrapper)."""
    assert time_dim >= 4, "time_dim must be >= 4 (sinusoidal emb divides by half_dim-1)"
    d_in = window_size * feature_dim
    half = time_dim // 2
    D_PAD = _round_up(d_in, 128)
    H_PAD = _round_up(hidden_dim, 128)
    HALF_PAD = _round_up(half, 128)
    T2_PAD = _round_up(2 * time_dim, 128)
    T_PAD = _round_up(time_dim, 128)
    W_MAX = max(D_PAD, H_PAD, HALF_PAD, T2_PAD, T_PAD)
    f32, bf16 = jnp.float32, jnp.bfloat16

    def padw(a, rows, cols):
        a = jnp.asarray(a, f32)
        return jnp.pad(a, ((0, rows - a.shape[0]), (0, cols - a.shape[1]))).astype(bf16)

    def padv(v):
        v = jnp.asarray(v, f32).reshape(1, -1)
        return jnp.pad(v, ((0, 0), (0, W_MAX - v.shape[1])))

    # Fused-K weight for time-MLP layer 1: rows [0:half] take the sin half of
    # the embedding, rows [HALF_PAD:HALF_PAD+half] take the cos half.
    wt1 = jnp.asarray(params["wt1"], f32)
    wt1_packed = jnp.zeros((2 * HALF_PAD, T2_PAD), f32)
    wt1_packed = wt1_packed.at[:half, :2 * time_dim].set(wt1[:half])
    wt1_packed = wt1_packed.at[HALF_PAD:HALF_PAD + half, :2 * time_dim].set(wt1[half:])

    # Fused-K weight for Block 1: rows [0:hidden] take h, rows
    # [H_PAD:H_PAD+time_dim] take the time embedding.
    w1 = jnp.asarray(params["w1"], f32)
    w1_packed = jnp.zeros((H_PAD + T_PAD, H_PAD), f32)
    w1_packed = w1_packed.at[:hidden_dim, :hidden_dim].set(w1[:hidden_dim])
    w1_packed = w1_packed.at[H_PAD:H_PAD + time_dim, :hidden_dim].set(w1[hidden_dim:])

    # Constant sinusoidal frequency table (hoisted out of the kernel).
    scale = math.log(10000.0) / (half - 1)
    freqs = jnp.exp(jnp.arange(half, dtype=f32) * (-scale))

    vec = jnp.concatenate([
        padv(freqs),                                                    # 0
        padv(params["b_in"]),                                           # 1
        padv(params["bt1"]),                                            # 2
        padv(params["bt2"]),                                            # 3
        padv(params["b1"]), padv(params["g1"]), padv(params["be1"]),    # 4-6
        padv(params["b2"]), padv(params["g2"]), padv(params["be2"]),    # 7-9
        padv(params["b3"]), padv(params["g3"]), padv(params["be3"]),    # 10-12
        padv(params["bo"]),                                             # 13
    ], axis=0)

    return dict(
        w_in=padw(params["w_in"], D_PAD, H_PAD),
        wt1=wt1_packed.astype(bf16),
        wt2=padw(params["wt2"], T2_PAD, T_PAD),
        w1=w1_packed.astype(bf16),
        w2=padw(params["w2"], H_PAD, H_PAD),
        w3=padw(params["w3"], H_PAD, H_PAD),
        wo=padw(params["wo"], H_PAD, D_PAD),
        vec=vec,
    )


# ---------------------------------------------------------------------------
# Forward wrapper
# ---------------------------------------------------------------------------
def diffusion_forward(x, t, packed, *, window_size, feature_dim, hidden_dim, time_dim):
    B = x.shape[0]
    d_in = window_size * feature_dim
    half = time_dim // 2
    f32, bf16 = jnp.float32, jnp.bfloat16

    D_PAD = _round_up(d_in, 128)
    H_PAD = _round_up(hidden_dim, 128)
    HALF_PAD = _round_up(half, 128)
    T2_PAD = _round_up(2 * time_dim, 128)
    T_PAD = _round_up(time_dim, 128)

    # ---- batch tiling: big tiles (per-step overhead dominates at these
    # feature widths), but keep >=2 grid steps when the batch allows so both
    # v7x TensorCores get work through the "parallel" axis.
    B8 = _round_up(max(B, 1), 8)
    TILE_B_MAX = 1024
    if B8 >= 2 * TILE_B_MAX:
        TILE_B = TILE_B_MAX
    elif B8 >= 16:
        TILE_B = _round_up((B8 + 1) // 2, 8)
    else:
        TILE_B = B8
    B_pad = _round_up(B8, TILE_B)
    grid = (B_pad // TILE_B,)

    # ---- activations ---------------------------------------------------------
    x_flat = x.reshape(B, d_in).astype(f32)
    x_p = jnp.pad(x_flat, ((0, B_pad - B), (0, D_PAD - d_in))).astype(bf16)
    if t is None:
        t = jnp.zeros((B,), f32)
    t_p = jnp.pad(t.astype(f32).reshape(B, 1), ((0, B_pad - B), (0, 0)))

    inputs = (x_p, t_p,
              packed["w_in"], packed["wt1"], packed["wt2"], packed["w1"],
              packed["w2"], packed["w3"], packed["wo"], packed["vec"])

    in_specs = [
        pl.BlockSpec((TILE_B, D_PAD), lambda i: (i, 0)),
        pl.BlockSpec((TILE_B, 1), lambda i: (i, 0)),
    ] + [pl.BlockSpec(a.shape, lambda i: (0, 0)) for a in inputs[2:]]
    out_spec = pl.BlockSpec((TILE_B, D_PAD), lambda i: (i, 0))

    # ---- VMEM budget, clamped to the actual chip capacity (v7x = 64 MiB) ----
    def nbytes(a):
        return int(a.size) * int(jnp.dtype(a.dtype).itemsize)

    const_bytes = sum(nbytes(a) for a in inputs[2:])
    act_bytes = TILE_B * (D_PAD * 2 + 4) + TILE_B * D_PAD * 4        # x, t, out tiles
    temp_bytes = TILE_B * 4 * (6 * H_PAD + 2 * HALF_PAD + T2_PAD + T_PAD + D_PAD)
    vmem_needed = 2 * const_bytes + 2 * act_bytes + temp_bytes       # 2x: double buffers
    vmem_cap = 64 << 20
    try:
        vmem_cap = int(getattr(pltpu.get_tpu_info(), "vmem_capacity_bytes", vmem_cap))
    except Exception:
        pass
    vmem_limit = int(min(max(int(vmem_needed * 1.25), 32 << 20), (vmem_cap * 3) // 4))
    # TODO(synk): for very large hidden_dim, tile the output (N) dim with an
    # extra grid axis instead of keeping every HxH weight resident in VMEM.

    flops = 2 * B_pad * (
        D_PAD * H_PAD                    # input proj
        + 2 * HALF_PAD * T2_PAD          # time MLP layer 1 (fused sin|cos)
        + T2_PAD * T_PAD                 # time MLP layer 2
        + (H_PAD + T_PAD) * H_PAD        # block 1 (fused h|time_emb)
        + 2 * H_PAD * H_PAD              # blocks 2, 3
        + H_PAD * D_PAD                  # output proj
    )
    transcendentals = B_pad * (2 * HALF_PAD + 2 * (T2_PAD + 3 * H_PAD) + 3)
    bytes_accessed = sum(nbytes(a) for a in inputs) + B_pad * D_PAD * 4
    cost = pl.CostEstimate(flops=flops, transcendentals=transcendentals,
                           bytes_accessed=bytes_accessed)

    out_p = pl.pallas_call(
        functools.partial(diffusion_fwd_kernel, n_hidden=hidden_dim),
        out_shape=jax.ShapeDtypeStruct((B_pad, D_PAD), f32),
        grid=grid,
        in_specs=in_specs,
        out_specs=out_spec,
        compiler_params=pltpu.CompilerParams(
            dimension_semantics=("parallel",),
            vmem_limit_bytes=vmem_limit,
        ),
        cost_estimate=cost,
    )(*inputs)

    return out_p[:B, :d_in].reshape(B, window_size, feature_dim)


# ---------------------------------------------------------------------------
# Pure-JAX reference (mirrors the torch forward in eval mode, with the same
# bf16-in / f32-accumulate matmul precision as the kernel).
# ---------------------------------------------------------------------------
def reference_forward(x, t, params, *, window_size, feature_dim, hidden_dim, time_dim):
    B = x.shape[0]
    d_in = window_size * feature_dim
    half = time_dim // 2
    f32, bf16 = jnp.float32, jnp.bfloat16

    def mm(a, w):
        return jnp.dot(a.astype(bf16), w.astype(bf16), preferred_element_type=f32)

    def silu(v):
        return v * jax.nn.sigmoid(v)

    def ln(v, g, b, eps=1e-5):
        mu = jnp.mean(v, -1, keepdims=True)
        var = jnp.mean(jnp.square(v - mu), -1, keepdims=True)
        return (v - mu) * jax.lax.rsqrt(var + eps) * g + b

    xf = x.reshape(B, d_in).astype(f32)
    if t is None:
        t = jnp.zeros((B,), f32)
    h = mm(xf, params["w_in"]) + params["b_in"]

    scale = math.log(10000.0) / (half - 1)
    freqs = jnp.exp(jnp.arange(half, dtype=f32) * (-scale))
    arg = t.astype(f32)[:, None] * freqs[None, :]
    temb = jnp.concatenate([jnp.sin(arg), jnp.cos(arg)], axis=-1)
    te = silu(mm(temb, params["wt1"]) + params["bt1"])
    te = mm(te, params["wt2"]) + params["bt2"]

    hc = jnp.concatenate([h, te], axis=1)
    h1 = silu(ln(mm(hc, params["w1"]) + params["b1"], params["g1"], params["be1"]))
    h2 = silu(ln(mm(h1, params["w2"]) + params["b2"], params["g2"], params["be2"]))
    h3 = silu(ln(mm(h2, params["w3"]) + params["b3"], params["g3"], params["be3"]))
    out = mm(h3, params["wo"]) + params["bo"]
    return out.reshape(B, window_size, feature_dim)


if __name__ == "__main__":
    # Small shapes consistent with the module's forward.
    batch, window_size, feature_dim = 8, 8, 4
    hidden_dim, time_dim = 32, 16

    key = jax.random.PRNGKey(0)
    kx, kt, kp = jax.random.split(key, 3)
    x = jax.random.normal(kx, (batch, window_size, feature_dim), jnp.float32)
    t = jax.random.randint(kt, (batch,), 0, 1000).astype(jnp.float32)

    params = init_params(kp, window_size, feature_dim, hidden_dim, time_dim)
    packed = prepare_params(params, window_size=window_size, feature_dim=feature_dim,
                            hidden_dim=hidden_dim, time_dim=time_dim)

    fwd = jax.jit(functools.partial(
        diffusion_forward, window_size=window_size, feature_dim=feature_dim,
        hidden_dim=hidden_dim, time_dim=time_dim))

    out = jax.block_until_ready(fwd(x, t, packed))
    assert out.shape == (batch, window_size, feature_dim)
    assert bool(jnp.all(jnp.isfinite(out)))

    ref = reference_forward(x, t, params, window_size=window_size,
                            feature_dim=feature_dim, hidden_dim=hidden_dim,
                            time_dim=time_dim)
    max_err = float(jnp.max(jnp.abs(out - ref)))
    assert max_err < 1e-2, f"mismatch vs reference: {max_err}"

    print("KERNEL_OK")
</pallas_src>

<mosaic_0001>
module attributes {stable_mosaic.version = 11 : i64} {
  func.func @diffusion_fwd_kernel(%arg0: i32, %arg1: memref<8x128xbf16, #tpu.memory_space<vmem>>, %arg2: memref<8x1xf32, #tpu.memory_space<vmem>>, %arg3: memref<128x128xbf16, #tpu.memory_space<vmem>>, %arg4: memref<256x128xbf16, #tpu.memory_space<vmem>>, %arg5: memref<128x128xbf16, #tpu.memory_space<vmem>>, %arg6: memref<256x128xbf16, #tpu.memory_space<vmem>>, %arg7: memref<128x128xbf16, #tpu.memory_space<vmem>>, %arg8: memref<128x128xbf16, #tpu.memory_space<vmem>>, %arg9: memref<128x128xbf16, #tpu.memory_space<vmem>>, %arg10: memref<14x128xf32, #tpu.memory_space<vmem>>, %arg11: memref<8x128xf32, #tpu.memory_space<vmem>>) attributes {dimension_semantics = [#tpu.dimension_semantics<parallel>], iteration_bounds = array<i64: 1>, scalar_prefetch = 0 : i64, scratch_operands = 0 : i64, tpu.core_type = #tpu.core_type<tc>, window_params = [{transform_indices = @transform_0, window_bounds = array<i64: 8, 128>}, {transform_indices = @transform_1, window_bounds = array<i64: 8, 1>}, {pipeline_mode = #tpu.pipeline_mode<synchronous>, transform_indices = @transform_2, window_bounds = array<i64: 128, 128>}, {pipeline_mode = #tpu.pipeline_mode<synchronous>, transform_indices = @transform_3, window_bounds = array<i64: 256, 128>}, {pipeline_mode = #tpu.pipeline_mode<synchronous>, transform_indices = @transform_4, window_bounds = array<i64: 128, 128>}, {pipeline_mode = #tpu.pipeline_mode<synchronous>, transform_indices = @transform_5, window_bounds = array<i64: 256, 128>}, {pipeline_mode = #tpu.pipeline_mode<synchronous>, transform_indices = @transform_6, window_bounds = array<i64: 128, 128>}, {pipeline_mode = #tpu.pipeline_mode<synchronous>, transform_indices = @transform_7, window_bounds = array<i64: 128, 128>}, {pipeline_mode = #tpu.pipeline_mode<synchronous>, transform_indices = @transform_8, window_bounds = array<i64: 128, 128>}, {pipeline_mode = #tpu.pipeline_mode<synchronous>, transform_indices = @transform_9, window_bounds = array<i64: 14, 128>}, {transform_indices = @transform_10, window_bounds = array<i64: 8, 128>}]} {
    %c0 = arith.constant 0 : index
    %c0_0 = arith.constant 0 : index
    %0 = vector.load %arg10[%c0, %c0_0] : memref<14x128xf32, #tpu.memory_space<vmem>>, vector<1x128xf32>
    %c1 = arith.constant 1 : index
    %c0_1 = arith.constant 0 : index
    %1 = vector.load %arg10[%c1, %c0_1] : memref<14x128xf32, #tpu.memory_space<vmem>>, vector<1x128xf32>
    %c2 = arith.constant 2 : index
    %c0_2 = arith.constant 0 : index
    %2 = vector.load %arg10[%c2, %c0_2] : memref<14x128xf32, #tpu.memory_space<vmem>>, vector<1x128xf32>
    %c3 = arith.constant 3 : index
    %c0_3 = arith.constant 0 : index
    %3 = vector.load %arg10[%c3, %c0_3] : memref<14x128xf32, #tpu.memory_space<vmem>>, vector<1x128xf32>
    %c4 = arith.constant 4 : index
    %c0_4 = arith.constant 0 : index
    %4 = vector.load %arg10[%c4, %c0_4] : memref<14x128xf32, #tpu.memory_space<vmem>>, vector<1x128xf32>
    %c5 = arith.constant 5 : index
    %c0_5 = arith.constant 0 : index
    %5 = vector.load %arg10[%c5, %c0_5] : memref<14x128xf32, #tpu.memory_space<vmem>>, vector<1x128xf32>
    %c6 = arith.constant 6 : index
    %c0_6 = arith.constant 0 : index
    %6 = vector.load %arg10[%c6, %c0_6] : memref<14x128xf32, #tpu.memory_space<vmem>>, vector<1x128xf32>
    %c7 = arith.constant 7 : index
    %c0_7 = arith.constant 0 : index
    %7 = vector.load %arg10[%c7, %c0_7] : memref<14x128xf32, #tpu.memory_space<vmem>>, vector<1x128xf32>
    %c8 = arith.constant 8 : index
    %c0_8 = arith.constant 0 : index
    %8 = vector.load %arg10[%c8, %c0_8] : memref<14x128xf32, #tpu.memory_space<vmem>>, vector<1x128xf32>
    %c9 = arith.constant 9 : index
    %c0_9 = arith.constant 0 : index
    %9 = vector.load %arg10[%c9, %c0_9] : memref<14x128xf32, #tpu.memory_space<vmem>>, vector<1x128xf32>
    %c10 = arith.constant 10 : index
    %c0_10 = arith.constant 0 : index
    %10 = vector.load %arg10[%c10, %c0_10] : memref<14x128xf32, #tpu.memory_space<vmem>>, vector<1x128xf32>
    %c11 = arith.constant 11 : index
    %c0_11 = arith.constant 0 : index
    %11 = vector.load %arg10[%c11, %c0_11] : memref<14x128xf32, #tpu.memory_space<vmem>>, vector<1x128xf32>
    %c12 = arith.constant 12 : index
    %c0_12 = arith.constant 0 : index
    %12 = vector.load %arg10[%c12, %c0_12] : memref<14x128xf32, #tpu.memory_space<vmem>>, vector<1x128xf32>
    %c13 = arith.constant 13 : index
    %c0_13 = arith.constant 0 : index
    %13 = vector.load %arg10[%c13, %c0_13] : memref<14x128xf32, #tpu.memory_space<vmem>>, vector<1x128xf32>
    %c0_14 = arith.constant 0 : index
    %c0_15 = arith.constant 0 : index
    %14 = vector.load %arg1[%c0_14, %c0_15] : memref<8x128xbf16, #tpu.memory_space<vmem>>, vector<8x128xbf16>
    %c0_16 = arith.constant 0 : index
    %c0_17 = arith.constant 0 : index
    %15 = vector.load %arg3[%c0_16, %c0_17] : memref<128x128xbf16, #tpu.memory_space<vmem>>, vector<128x128xbf16>
    %cst = arith.constant dense<0.000000e+00> : vector<8x128xf32>
    %16 = tpu.matmul %14, %15, %cst {dimension_numbers = #tpu.dot_dimension_numbers<[1], [0], [0], [1], [0, 0, 1, 1], [], []>} : vector<8x128xbf16>, vector<128x128xbf16>, vector<8x128xf32> -> vector<8x128xf32>
    %17 = vector.broadcast %1 : vector<1x128xf32> to vector<8x128xf32>
    %18 = arith.addf %16, %17 : vector<8x128xf32>
    %c0_18 = arith.constant 0 : index
    %c0_19 = arith.constant 0 : index
    %19 = vector.load %arg2[%c0_18, %c0_19] : memref<8x1xf32, #tpu.memory_space<vmem>>, vector<8x1xf32>
    %20 = vector.broadcast %19 : vector<8x1xf32> to vector<8x128xf32>
    %21 = vector.broadcast %0 : vector<1x128xf32> to vector<8x128xf32>
    %22 = arith.mulf %20, %21 : vector<8x128xf32>
    %23 = math.sin %22 : vector<8x128xf32>
    %24 = math.cos %22 : vector<8x128xf32>
    %25 = tpu.concatenate %23, %24 in 1 : vector<8x128xf32>, vector<8x128xf32> -> vector<8x256xf32>
    %26 = arith.truncf %25 : vector<8x256xf32> to vector<8x256xbf16>
    %c0_20 = arith.constant 0 : index
    %c0_21 = arith.constant 0 : index
    %27 = vector.load %arg4[%c0_20, %c0_21] : memref<256x128xbf16, #tpu.memory_space<vmem>>, vector<256x128xbf16>
    %cst_22 = arith.constant dense<0.000000e+00> : vector<8x128xf32>
    %28 = tpu.matmul %26, %27, %cst_22 {dimension_numbers = #tpu.dot_dimension_numbers<[1], [0], [0], [1], [0, 0, 1, 1], [], []>} : vector<8x256xbf16>, vector<256x128xbf16>, vector<8x128xf32> -> vector<8x128xf32>
    %29 = vector.broadcast %2 : vector<1x128xf32> to vector<8x128xf32>
    %30 = arith.addf %28, %29 : vector<8x128xf32>
    %cst_23 = arith.constant 0.000000e+00 : f32
    %31 = vector.broadcast %cst_23 : f32 to vector<8x128xf32>
    %32 = arith.subf %31, %30 : vector<8x128xf32>
    %33 = math.exp %32 : vector<8x128xf32>
    %cst_24 = arith.constant 1.000000e+00 : f32
    %34 = vector.broadcast %cst_24 : f32 to vector<8x128xf32>
    %35 = arith.addf %34, %33 : vector<8x128xf32>
    %36 = tpu.reciprocal %35 {approx = true} : vector<8x128xf32> -> vector<8x128xf32>
    %37 = arith.mulf %30, %36 : vector<8x128xf32>
    %38 = arith.truncf %37 : vector<8x128xf32> to vector<8x128xbf16>
    %c0_25 = arith.constant 0 : index
    %c0_26 = arith.constant 0 : index
    %39 = vector.load %arg5[%c0_25, %c0_26] : memref<128x128xbf16, #tpu.memory_space<vmem>>, vector<128x128xbf16>
    %cst_27 = arith.constant dense<0.000000e+00> : vector<8x128xf32>
    %40 = tpu.matmul %38, %39, %cst_27 {dimension_numbers = #tpu.dot_dimension_numbers<[1], [0], [0], [1], [0, 0, 1, 1], [], []>} : vector<8x128xbf16>, vector<128x128xbf16>, vector<8x128xf32> -> vector<8x128xf32>
    %41 = vector.broadcast %3 : vector<1x128xf32> to vector<8x128xf32>
    %42 = arith.addf %40, %41 : vector<8x128xf32>
    %43 = arith.truncf %18 : vector<8x128xf32> to vector<8x128xbf16>
    %44 = arith.truncf %42 : vector<8x128xf32> to vector<8x128xbf16>
    %45 = tpu.concatenate %43, %44 in 1 : vector<8x128xbf16>, vector<8x128xbf16> -> vector<8x256xbf16>
    %c0_28 = arith.constant 0 : index
    %c0_29 = arith.constant 0 : index
    %46 = vector.load %arg6[%c0_28, %c0_29] : memref<256x128xbf16, #tpu.memory_space<vmem>>, vector<256x128xbf16>
    %cst_30 = arith.constant dense<0.000000e+00> : vector<8x128xf32>
    %47 = tpu.matmul %45, %46, %cst_30 {dimension_numbers = #tpu.dot_dimension_numbers<[1], [0], [0], [1], [0, 0, 1, 1], [], []>} : vector<8x256xbf16>, vector<256x128xbf16>, vector<8x128xf32> -> vector<8x128xf32>
    %48 = vector.broadcast %4 : vector<1x128xf32> to vector<8x128xf32>
    %49 = arith.addf %47, %48 : vector<8x128xf32>
    %cst_31 = arith.constant dense<0.000000e+00> : vector<8xf32>
    %50 = vector.multi_reduction <add>, %49, %cst_31 [1] : vector<8x128xf32> to vector<8xf32>
    %51 = vector.shape_cast %50 : vector<8xf32> to vector<8x1xf32>
    %cst_32 = arith.constant 3.125000e-02 : f32
    %52 = vector.broadcast %cst_32 : f32 to vector<8x1xf32>
    %53 = arith.mulf %51, %52 : vector<8x1xf32>
    %54 = arith.mulf %49, %49 : vector<8x128xf32>
    %cst_33 = arith.constant dense<0.000000e+00> : vector<8xf32>
    %55 = vector.multi_reduction <add>, %54, %cst_33 [1] : vector<8x128xf32> to vector<8xf32>
    %56 = vector.shape_cast %55 : vector<8xf32> to vector<8x1xf32>
    %cst_34 = arith.constant 3.125000e-02 : f32
    %57 = vector.broadcast %cst_34 : f32 to vector<8x1xf32>
    %58 = arith.mulf %56, %57 : vector<8x1xf32>
    %59 = arith.mulf %53, %53 : vector<8x1xf32>
    %60 = arith.subf %58, %59 : vector<8x1xf32>
    %cst_35 = arith.constant 0.000000e+00 : f32
    %61 = vector.broadcast %cst_35 : f32 to vector<8x1xf32>
    %62 = arith.maximumf %60, %61 : vector<8x1xf32>
    %63 = vector.broadcast %53 : vector<8x1xf32> to vector<8x128xf32>
    %64 = arith.subf %49, %63 : vector<8x128xf32>
    %cst_36 = arith.constant 9.99999974E-6 : f32
    %65 = vector.broadcast %cst_36 : f32 to vector<8x1xf32>
    %66 = arith.addf %62, %65 : vector<8x1xf32>
    %67 = math.rsqrt %66 : vector<8x1xf32>
    %68 = vector.broadcast %67 : vector<8x1xf32> to vector<8x128xf32>
    %69 = arith.mulf %64, %68 : vector<8x128xf32>
    %70 = vector.broadcast %5 : vector<1x128xf32> to vector<8x128xf32>
    %71 = arith.mulf %69, %70 : vector<8x128xf32>
    %72 = vector.broadcast %6 : vector<1x128xf32> to vector<8x128xf32>
    %73 = arith.addf %71, %72 : vector<8x128xf32>
    %cst_37 = arith.constant 0.000000e+00 : f32
    %74 = vector.broadcast %cst_37 : f32 to vector<8x128xf32>
    %75 = arith.subf %74, %73 : vector<8x128xf32>
    %76 = math.exp %75 : vector<8x128xf32>
    %cst_38 = arith.constant 1.000000e+00 : f32
    %77 = vector.broadcast %cst_38 : f32 to vector<8x128xf32>
    %78 = arith.addf %77, %76 : vector<8x128xf32>
    %79 = tpu.reciprocal %78 {approx = true} : vector<8x128xf32> -> vector<8x128xf32>
    %80 = arith.mulf %73, %79 : vector<8x128xf32>
    %81 = arith.truncf %80 : vector<8x128xf32> to vector<8x128xbf16>
    %c0_39 = arith.constant 0 : index
    %c0_40 = arith.constant 0 : index
    %82 = vector.load %arg7[%c0_39, %c0_40] : memref<128x128xbf16, #tpu.memory_space<vmem>>, vector<128x128xbf16>
    %cst_41 = arith.constant dense<0.000000e+00> : vector<8x128xf32>
    %83 = tpu.matmul %81, %82, %cst_41 {dimension_numbers = #tpu.dot_dimension_numbers<[1], [0], [0], [1], [0, 0, 1, 1], [], []>} : vector<8x128xbf16>, vector<128x128xbf16>, vector<8x128xf32> -> vector<8x128xf32>
    %84 = vector.broadcast %7 : vector<1x128xf32> to vector<8x128xf32>
    %85 = arith.addf %83, %84 : vector<8x128xf32>
    %cst_42 = arith.constant dense<0.000000e+00> : vector<8xf32>
    %86 = vector.multi_reduction <add>, %85, %cst_42 [1] : vector<8x128xf32> to vector<8xf32>
    %87 = vector.shape_cast %86 : vector<8xf32> to vector<8x1xf32>
    %cst_43 = arith.constant 3.125000e-02 : f32
    %88 = vector.broadcast %cst_43 : f32 to vector<8x1xf32>
    %89 = arith.mulf %87, %88 : vector<8x1xf32>
    %90 = arith.mulf %85, %85 : vector<8x128xf32>
    %cst_44 = arith.constant dense<0.000000e+00> : vector<8xf32>
    %91 = vector.multi_reduction <add>, %90, %cst_44 [1] : vector<8x128xf32> to vector<8xf32>
    %92 = vector.shape_cast %91 : vector<8xf32> to vector<8x1xf32>
    %cst_45 = arith.constant 3.125000e-02 : f32
    %93 = vector.broadcast %cst_45 : f32 to vector<8x1xf32>
    %94 = arith.mulf %92, %93 : vector<8x1xf32>
    %95 = arith.mulf %89, %89 : vector<8x1xf32>
    %96 = arith.subf %94, %95 : vector<8x1xf32>
    %cst_46 = arith.constant 0.000000e+00 : f32
    %97 = vector.broadcast %cst_46 : f32 to vector<8x1xf32>
    %98 = arith.maximumf %96, %97 : vector<8x1xf32>
    %99 = vector.broadcast %89 : vector<8x1xf32> to vector<8x128xf32>
    %100 = arith.subf %85, %99 : vector<8x128xf32>
    %cst_47 = arith.constant 9.99999974E-6 : f32
    %101 = vector.broadcast %cst_47 : f32 to vector<8x1xf32>
    %102 = arith.addf %98, %101 : vector<8x1xf32>
    %103 = math.rsqrt %102 : vector<8x1xf32>
    %104 = vector.broadcast %103 : vector<8x1xf32> to vector<8x128xf32>
    %105 = arith.mulf %100, %104 : vector<8x128xf32>
    %106 = vector.broadcast %8 : vector<1x128xf32> to vector<8x128xf32>
    %107 = arith.mulf %105, %106 : vector<8x128xf32>
    %108 = vector.broadcast %9 : vector<1x128xf32> to vector<8x128xf32>
    %109 = arith.addf %107, %108 : vector<8x128xf32>
    %cst_48 = arith.constant 0.000000e+00 : f32
    %110 = vector.broadcast %cst_48 : f32 to vector<8x128xf32>
    %111 = arith.subf %110, %109 : vector<8x128xf32>
    %112 = math.exp %111 : vector<8x128xf32>
    %cst_49 = arith.constant 1.000000e+00 : f32
    %113 = vector.broadcast %cst_49 : f32 to vector<8x128xf32>
    %114 = arith.addf %113, %112 : vector<8x128xf32>
    %115 = tpu.reciprocal %114 {approx = true} : vector<8x128xf32> -> vector<8x128xf32>
    %116 = arith.mulf %109, %115 : vector<8x128xf32>
    %117 = arith.truncf %116 : vector<8x128xf32> to vector<8x128xbf16>
    %c0_50 = arith.constant 0 : index
    %c0_51 = arith.constant 0 : index
    %118 = vector.load %arg8[%c0_50, %c0_51] : memref<128x128xbf16, #tpu.memory_space<vmem>>, vector<128x128xbf16>
    %cst_52 = arith.constant dense<0.000000e+00> : vector<8x128xf32>
    %119 = tpu.matmul %117, %118, %cst_52 {dimension_numbers = #tpu.dot_dimension_numbers<[1], [0], [0], [1], [0, 0, 1, 1], [], []>} : vector<8x128xbf16>, vector<128x128xbf16>, vector<8x128xf32> -> vector<8x128xf32>
    %120 = vector.broadcast %10 : vector<1x128xf32> to vector<8x128xf32>
    %121 = arith.addf %119, %120 : vector<8x128xf32>
    %cst_53 = arith.constant dense<0.000000e+00> : vector<8xf32>
    %122 = vector.multi_reduction <add>, %121, %cst_53 [1] : vector<8x128xf32> to vector<8xf32>
    %123 = vector.shape_cast %122 : vector<8xf32> to vector<8x1xf32>
    %cst_54 = arith.constant 3.125000e-02 : f32
    %124 = vector.broadcast %cst_54 : f32 to vector<8x1xf32>
    %125 = arith.mulf %123, %124 : vector<8x1xf32>
    %126 = arith.mulf %121, %121 : vector<8x128xf32>
    %cst_55 = arith.constant dense<0.000000e+00> : vector<8xf32>
    %127 = vector.multi_reduction <add>, %126, %cst_55 [1] : vector<8x128xf32> to vector<8xf32>
    %128 = vector.shape_cast %127 : vector<8xf32> to vector<8x1xf32>
    %cst_56 = arith.constant 3.125000e-02 : f32
    %129 = vector.broadcast %cst_56 : f32 to vector<8x1xf32>
    %130 = arith.mulf %128, %129 : vector<8x1xf32>
    %131 = arith.mulf %125, %125 : vector<8x1xf32>
    %132 = arith.subf %130, %131 : vector<8x1xf32>
    %cst_57 = arith.constant 0.000000e+00 : f32
    %133 = vector.broadcast %cst_57 : f32 to vector<8x1xf32>
    %134 = arith.maximumf %132, %133 : vector<8x1xf32>
    %135 = vector.broadcast %125 : vector<8x1xf32> to vector<8x128xf32>
    %136 = arith.subf %121, %135 : vector<8x128xf32>
    %cst_58 = arith.constant 9.99999974E-6 : f32
    %137 = vector.broadcast %cst_58 : f32 to vector<8x1xf32>
    %138 = arith.addf %134, %137 : vector<8x1xf32>
    %139 = math.rsqrt %138 : vector<8x1xf32>
    %140 = vector.broadcast %139 : vector<8x1xf32> to vector<8x128xf32>
    %141 = arith.mulf %136, %140 : vector<8x128xf32>
    %142 = vector.broadcast %11 : vector<1x128xf32> to vector<8x128xf32>
    %143 = arith.mulf %141, %142 : vector<8x128xf32>
    %144 = vector.broadcast %12 : vector<1x128xf32> to vector<8x128xf32>
    %145 = arith.addf %143, %144 : vector<8x128xf32>
    %cst_59 = arith.constant 0.000000e+00 : f32
    %146 = vector.broadcast %cst_59 : f32 to vector<8x128xf32>
    %147 = arith.subf %146, %145 : vector<8x128xf32>
    %148 = math.exp %147 : vector<8x128xf32>
    %cst_60 = arith.constant 1.000000e+00 : f32
    %149 = vector.broadcast %cst_60 : f32 to vector<8x128xf32>
    %150 = arith.addf %149, %148 : vector<8x128xf32>
    %151 = tpu.reciprocal %150 {approx = true} : vector<8x128xf32> -> vector<8x128xf32>
    %152 = arith.mulf %145, %151 : vector<8x128xf32>
    %153 = arith.truncf %152 : vector<8x128xf32> to vector<8x128xbf16>
    %c0_61 = arith.constant 0 : index
    %c0_62 = arith.constant 0 : index
    %154 = vector.load %arg9[%c0_61, %c0_62] : memref<128x128xbf16, #tpu.memory_space<vmem>>, vector<128x128xbf16>
    %cst_63 = arith.constant dense<0.000000e+00> : vector<8x128xf32>
    %155 = tpu.matmul %153, %154, %cst_63 {dimension_numbers = #tpu.dot_dimension_numbers<[1], [0], [0], [1], [0, 0, 1, 1], [], []>} : vector<8x128xbf16>, vector<128x128xbf16>, vector<8x128xf32> -> vector<8x128xf32>
    %156 = vector.broadcast %13 : vector<1x128xf32> to vector<8x128xf32>
    %157 = arith.addf %155, %156 : vector<8x128xf32>
    %c0_64 = arith.constant 0 : index
    %c0_65 = arith.constant 0 : index
    %158 = vector.load %arg11[%c0_64, %c0_65] : memref<8x128xf32, #tpu.memory_space<vmem>>, vector<8x128xf32>
    tpu.vector_store %arg11[%c0_64, %c0_65], %157 {strides = array<i32>} : memref<8x128xf32, #tpu.memory_space<vmem>>, vector<8x128xf32>,
    return
  }
  func.func @transform_0(%arg0: i32) -> (i32, i32) {
    %c0_i32 = arith.constant 0 : i32
    %c0_i32_0 = arith.constant 0 : i32
    return %arg0, %c0_i32 : i32, i32
  }
  func.func @transform_1(%arg0: i32) -> (i32, i32) {
    %c0_i32 = arith.constant 0 : i32
    %c0_i32_0 = arith.constant 0 : i32
    return %arg0, %c0_i32 : i32, i32
  }
  func.func @transform_2(%arg0: i32) -> (i32, i32) {
    %c0_i32 = arith.constant 0 : i32
    %c0_i32_0 = arith.constant 0 : i32
    %c0_i32_1 = arith.constant 0 : i32
    return %c0_i32, %c0_i32_0 : i32, i32
  }
  func.func @transform_3(%arg0: i32) -> (i32, i32) {
    %c0_i32 = arith.constant 0 : i32
    %c0_i32_0 = arith.constant 0 : i32
    %c0_i32_1 = arith.constant 0 : i32
    return %c0_i32, %c0_i32_0 : i32, i32
  }
  func.func @transform_4(%arg0: i32) -> (i32, i32) {
    %c0_i32 = arith.constant 0 : i32
    %c0_i32_0 = arith.constant 0 : i32
    %c0_i32_1 = arith.constant 0 : i32
    return %c0_i32, %c0_i32_0 : i32, i32
  }
  func.func @transform_5(%arg0: i32) -> (i32, i32) {
    %c0_i32 = arith.constant 0 : i32
    %c0_i32_0 = arith.constant 0 : i32
    %c0_i32_1 = arith.constant 0 : i32
    return %c0_i32, %c0_i32_0 : i32, i32
  }
  func.func @transform_6(%arg0: i32) -> (i32, i32) {
    %c0_i32 = arith.constant 0 : i32
    %c0_i32_0 = arith.constant 0 : i32
    %c0_i32_1 = arith.constant 0 : i32
    return %c0_i32, %c0_i32_0 : i32, i32
  }
  func.func @transform_7(%arg0: i32) -> (i32, i32) {
    %c0_i32 = arith.constant 0 : i32
    %c0_i32_0 = arith.constant 0 : i32
    %c0_i32_1 = arith.constant 0 : i32
    return %c0_i32, %c0_i32_0 : i32, i32
  }
  func.func @transform_8(%arg0: i32) -> (i32, i32) {
    %c0_i32 = arith.constant 0 : i32
    %c0_i32_0 = arith.constant 0 : i32
    %c0_i32_1 = arith.constant 0 : i32
    return %c0_i32, %c0_i32_0 : i32, i32
  }
  func.func @transform_9(%arg0: i32) -> (i32, i32) {
    %c0_i32 = arith.constant 0 : i32
    %c0_i32_0 = arith.constant 0 : i32
    %c0_i32_1 = arith.constant 0 : i32
    return %c0_i32, %c0_i32_0 : i32, i32
  }
  func.func @transform_10(%arg0: i32) -> (i32, i32) {
    %c0_i32 = arith.constant 0 : i32
    %c0_i32_0 = arith.constant 0 : i32
    return %arg0, %c0_i32 : i32, i32
  }
}

</mosaic_0001>

<bundles_post_ra>
// kernel: diffusion_forward.1
= control target key start
LH: loop header
LB: loop body
LE: loop exit
PB: predicated region body
PF: predicated region fallthrough
CT: control target
= control target key end

     0   :  { %15 = vsyncpa [#allocation3], 0  ;;  %s2157_s0 = inlined_call_operand.vmem [shape: bf16[8,128], index: 0, kind: input, shape index: {}]   ;;  %s2158_s1 = inlined_call_operand.vmem [shape: f32[8,1], index: 1, kind: input, shape index: {}]   ;;  %s2159_s2 = inlined_call_operand.hbm [shape: bf16[128,128], index: 2, kind: input, shape index: {}]   ;;  %s2160_s3 = inlined_call_operand.vmem [shape: bf16[256,128], index: 3, kind: input, shape index: {}]   ;;  %s2161_s4 = inlined_call_operand.hbm [shape: bf16[128,128], index: 4, kind: input, shape index: {}]   ;;  %s2162_s5 = inlined_call_operand.hbm [shape: bf16[256,128], index: 5, kind: input, shape index: {}]   ;;  %s2163_s6 = inlined_call_operand.hbm [shape: bf16[128,128], index: 6, kind: input, shape index: {}]   ;;  %s2164_s7 = inlined_call_operand.hbm [shape: bf16[128,128], index: 7, kind: input, shape index: {}]   ;;  %s2165_s8 = inlined_call_operand.hbm [shape: bf16[128,128], index: 8, kind: input, shape index: {}]   ;;  %s2166_s9 = inlined_call_operand.hbm [shape: f32[14,128], index: 9, kind: input, shape index: {}]   ;;  %s2167_s10 = inlined_call_operand.vmem [shape: f32[8,128], index: 10, kind: output, shape index: {}]  }
   0x1   :  { %16 = vsyncpa [#allocation5], 0 }
   0x2   :  { %17 = vsyncpa [#allocation8], 0 }
   0x3   :  { %18 = vsyncpa [#allocation11], 0  ;;  %s1915_s13 = smov [#allocation4]   ;;  %s1916_s15 = smov [#allocation7]  }
   0x4   :  { %s42_s14 = sshll.u32 %s1915_s13, 4  ;;  %s66_s16 = sshll.u32 %s1916_s15, 4  ;;  %s43_s14 = int_to_ptr.vmem [resolvable:$true] %s42_s14  ;;  %s67_s16 = int_to_ptr.vmem [resolvable:$true] %s66_s16 }
   0x5   :  { %s1775_s17 = scalar_lea.vmem %s43_s14, 1024  ;;  %p1780_p1 = scmp.lt.s32.totalorder %s43_s14, %s43_s14 }
   0x6   :  { %p1776_p0 = scmp.ne.s32.totalorder %s43_s14, %s1775_s17  ;;  %p1781_p2 = scmp.lt.s32.totalorder %s1775_s17, %s1775_s17 }
   0x8   :  { %p1782_p3 = por %p1781_p2, %p1780_p1 }
   0xa   :  { %p1783_p4 = pnand %p1782_p3, %p1776_p0 }
   0xc   :  { %1786 = shalt.err (!%p1783_p4)
}
   0xd   :  { %s1917_s18 = smov 64   ;;  %s1918_s19 = smov 4  }
   0xe   :  { %48 = dma.hbm_to_vmem [thread:$0]  %s2161_s4, 1024, %s43_s14, [#allocation5], %s1917_s18, %s1917_s18, %s1918_s19  }
   0xf   :  { %s1795_s22 = scalar_lea.vmem %s67_s16, 1024  ;;  %p1800_p6 = scmp.lt.s32.totalorder %s67_s16, %s67_s16 }
  0x10   :  { %p1796_p5 = scmp.ne.s32.totalorder %s67_s16, %s1795_s22  ;;  %p1801_p7 = scmp.lt.s32.totalorder %s1795_s22, %s1795_s22 }
  0x12   :  { %p1802_p8 = por %p1801_p7, %p1800_p6 }
  0x14   :  { %p1803_p9 = pnand %p1802_p8, %p1796_p5 }
  0x16   :  { %1806 = shalt.err (!%p1803_p9)
}
  0x17   :  { %72 = dma.hbm_to_vmem [thread:$0]  %s2163_s6, 1024, %s67_s16, [#allocation8], %s1917_s18, %s1917_s18, %s1918_s19  }
  0x18   :  { %s1919_s25 = smov [#allocation10]   ;;  %s1920_s27 = smov [#allocation2]  }
  0x19   :  { %s90_s26 = sshll.u32 %s1919_s25, 4  ;;  %s28_s28 = sshll.u32 %s1920_s27, 4  ;;  %s91_s26 = int_to_ptr.vmem [resolvable:$true] %s90_s26  ;;  %s29_s28 = int_to_ptr.vmem [resolvable:$true] %s28_s28 }
  0x1a   :  { %s1815_s4 = scalar_lea.vmem %s91_s26, 1024  ;;  %p1820_p11 = scmp.lt.s32.totalorder %s91_s26, %s91_s26 }
  0x1b   :  { %p1816_p10 = scmp.ne.s32.totalorder %s91_s26, %s1815_s4  ;;  %p1821_p12 = scmp.lt.s32.totalorder %s1815_s4, %s1815_s4 }
  0x1d   :  { %p1822_p13 = por %p1821_p12, %p1820_p11 }
  0x1f   :  { %p1823_p0 = pnand %p1822_p13, %p1816_p10 }
  0x21   :  { %1826 = shalt.err (!%p1823_p0)
}
  0x22   :  { %96 = dma.hbm_to_vmem [thread:$0]  %s2165_s8, 1024, %s91_s26, [#allocation11], %s1917_s18, %s1917_s18, %s1918_s19  }
  0x23   :  { %s1835_s6 = scalar_lea.vmem %s29_s28, 1024  ;;  %p1840_p2 = scmp.lt.s32.totalorder %s29_s28, %s29_s28 }
  0x24   :  { %p1836_p1 = scmp.ne.s32.totalorder %s29_s28, %s1835_s6  ;;  %p1841_p3 = scmp.lt.s32.totalorder %s1835_s6, %s1835_s6 }
  0x26   :  { %p1842_p4 = por %p1841_p3, %p1840_p2 }
  0x28   :  { %p1843_p5 = pnand %p1842_p4, %p1836_p1 }
  0x2a   :  { %1846 = shalt.err (!%p1843_p5)
}
  0x2b   :  { %34 = dma.hbm_to_vmem [thread:$0]  %s2159_s2, 1024, %s29_s28, [#allocation3], %s1917_s18, %s1917_s18, %s1918_s19  }
  0x2c   :  { %s1921_s13 = smov [#allocation6]   ;;  %s1922_s15 = smov [#allocation9]  }
  0x2d   :  { %s54_s14 = sshll.u32 %s1921_s13, 4  ;;  %s78_s16 = sshll.u32 %s1922_s15, 4  ;;  %s55_s14 = int_to_ptr.vmem [resolvable:$true] %s54_s14  ;;  %s79_s16 = int_to_ptr.vmem [resolvable:$true] %s78_s16 }
  0x2e   :  { %s1855_s8 = scalar_lea.vmem %s55_s14, 2048  ;;  %p1860_p7 = scmp.lt.s32.totalorder %s55_s14, %s55_s14 }
  0x2f   :  { %p1856_p6 = scmp.ne.s32.totalorder %s55_s14, %s1855_s8  ;;  %p1861_p8 = scmp.lt.s32.totalorder %s1855_s8, %s1855_s8 }
  0x31   :  { %p1862_p9 = por %p1861_p8, %p1860_p7 }
  0x33   :  { %p1863_p10 = pnand %p1862_p9, %p1856_p6 }
  0x35   :  { %1866 = shalt.err (!%p1863_p10)
}
  0x36   :  { %60 = dma.hbm_to_vmem [thread:$0]  %s2162_s5, 2048, %s55_s14, [#allocation5], %s1917_s18, %s1917_s18, %s1918_s19  }
  0x37   :  { %s1875_s2 = scalar_lea.vmem %s79_s16, 1024  ;;  %p1880_p12 = scmp.lt.s32.totalorder %s79_s16, %s79_s16 }
  0x38   :  { %p1876_p11 = scmp.ne.s32.totalorder %s79_s16, %s1875_s2  ;;  %p1881_p13 = scmp.lt.s32.totalorder %s1875_s2, %s1875_s2 }
  0x3a   :  { %p1882_p0 = por %p1881_p13, %p1880_p12 }
  0x3c   :  { %p1883_p1 = pnand %p1882_p0, %p1876_p11 }
  0x3e   :  { %1886 = shalt.err (!%p1883_p1)
}
  0x3f   :  { %84 = dma.hbm_to_vmem [thread:$0]  %s2164_s7, 1024, %s79_s16, [#allocation8], %s1917_s18, %s1917_s18, %s1918_s19  }
  0x40   :  { %s1923_s23 = smov [#allocation12]  }
  0x41   :  { %s102_s24 = sshll.u32 %s1923_s23, 4  ;;  %s103_s24 = int_to_ptr.vmem [resolvable:$true] %s102_s24 }
  0x42   :  { %s1895_s25 = scalar_lea.vmem %s103_s24, 256  ;;  %p1900_p3 = scmp.lt.s32.totalorder %s103_s24, %s103_s24 }
  0x43   :  { %p1896_p2 = scmp.ne.s32.totalorder %s103_s24, %s1895_s25  ;;  %p1901_p4 = scmp.lt.s32.totalorder %s1895_s25, %s1895_s25 }
  0x45   :  { %p1902_p5 = por %p1901_p4, %p1900_p3 }
  0x47   :  { %p1903_p6 = pnand %p1902_p5, %p1896_p2 }
  0x49   :  { %1906 = shalt.err (!%p1903_p6)
}
  0x4a   :  { %s1924_s5 = smov 128   ;;  %s1925_s26 = smov 8  }
  0x4b   :  { %108 = dma.hbm_to_vmem [thread:$0]  %s2166_s9, 256, %s103_s24, [#allocation11], %s1924_s5, %s1924_s5, %s1925_s26  }
  0x4c   :  { %1907 = dma.done.wait [#allocation3], 1024  }
  0x4d   :  { %1908 = vsyncadd [#allocation3], 4294966272 }
  0x4e   :  { %1909 = dma.done.wait [#allocation5], 3072  }
  0x4f   :  { %1910 = vsyncadd [#allocation5], 4294964224 }
  0x50   :  { %1911 = dma.done.wait [#allocation8], 2048  }
  0x51   :  { %1912 = vsyncadd [#allocation8], 4294965248 }
  0x52   :  { %1913 = dma.done.wait [#allocation11], 1280  }
  0x53   :  { %1914 = vsyncadd [#allocation11], 4294966016  ;;  %v1926_v0 = vmov 0   ;;  %v254_v1 = vld [vmem:[%s2158_s1] sm:$0xff]  ;;  %v1669_v2 = vld [vmem:[%s2160_s3 + $0x78] sm:$0xff]   ;;  %v1927_v19 = vmov 0.0  }
  0x54   :  { %1668 = vset.pattern.permute.xlu0 %v1926_v0  ;;  %v1670_v3 = vld [vmem:[%s2160_s3 + $0x38] sm:$0xff]   ;;  %v1671_v4 = vld [vmem:[%s2160_s3 + $0x70] sm:$0xff]   ;;  %1464 = vmatprep.subr.bf16.mxu1 %v1669_v2  ;;  %v1673_v6 = vld [vmem:[%s2160_s3 + $0x68] sm:$0xff]   ;;  %v1928_v39 = vmov 2102212464  }
  0x55   :  { %257 = vperm.xlu0 %1668, %v254_v1   ;;  %1465 = vmatpush3.bf16.msra.mxu1 %v1670_v3  ;;  %v1672_v5 = vld [vmem:[%s2160_s3 + $0x30] sm:$0xff]   ;;  %v1674_v7 = vld [vmem:[%s2160_s3 + $0x28] sm:$0xff]   ;;  %v1675_v8 = vld [vmem:[%s2160_s3 + $0x60] sm:$0xff]   ;;  %v1929_v41 = vmov 920167782  }
  0x56   :  { %1466 = vmatprep.subr.bf16.mxu1 %v1671_v4  ;;  %v1676_v9 = vld [vmem:[%s2160_s3 + $0x20] sm:$0xff]   ;;  %v1677_v10 = vld [vmem:[%s2160_s3 + $0x58] sm:$0xff]   ;;  %v1679_v12 = vld [vmem:[%s2160_s3 + $0x50] sm:$0xff]   ;;  %1544 = vmatprep.subr.bf16.mxu0 %v1927_v19  ;;  %v1930_v45 = vmov 1326507024  }
  0x57   :  { %v1678_v11 = vld [vmem:[%s2160_s3 + $0x18] sm:$0xff]   ;;  %v1680_v13 = vld [vmem:[%s2160_s3 + $0x10] sm:$0xff]   ;;  %v1681_v14 = vld [vmem:[%s2160_s3 + $0x48] sm:$0xff]   ;;  %v1931_v47 = vmov 683565275  }
  0x58   :  { %v1682_v15 = vld [vmem:[%s2160_s3 + $0x8] sm:$0xff]   ;;  %v1683_v16 = vld [vmem:[%s2160_s3 + $0x40] sm:$0xff]   ;;  %v1685_v18 = vld [vmem:[#allocation2 + $0x38] sm:$0xff]   ;;  %v1932_v49 = vmov 2475754826  }
  0x59   :  { %1467 = vmatpush3.bf16.msra.mxu1 %v1672_v5  ;;  %v1684_v17 = vld [vmem:[%s2160_s3] sm:$0xff]   ;;  %1545 = vmatpush3.bf16.msra.mxu0 %v1685_v18  ;;  %v1686_v20 = vld [vmem:[#allocation2 + $0x30] sm:$0xff]   ;;  %v1687_v21 = vld [vmem:[#allocation2 + $0x28] sm:$0xff]   ;;  %v1933_v52 = vmov 2131351028  }
  0x5a   :  { %1468 = vmatprep.subr.bf16.mxu1 %v1673_v6  ;;  %1546 = vmatprep.subr.bf16.mxu0 %v1927_v19  ;;  %v1688_v22 = vld [vmem:[#allocation2 + $0x20] sm:$0xff]   ;;  %v1689_v23 = vld [vmem:[#allocation2 + $0x18] sm:$0xff]   ;;  %v1690_v24 = vld [vmem:[#allocation2 + $0x10] sm:$0xff]  }
  0x5b   :  { %v1370_v25 = vld [vmem:[#allocation12] ss:$0 sm:$0xff] }
  0x5d   :  { %1469 = vmatpush3.bf16.msra.mxu1 %v1674_v7  ;;  %1547 = vmatpush3.bf16.msra.mxu0 %v1686_v20 }
  0x5e   :  { %1470 = vmatprep.subr.bf16.mxu1 %v1675_v8  ;;  %1548 = vmatprep.subr.bf16.mxu0 %v1927_v19 }
  0x61   :  { %1471 = vmatpush3.bf16.msra.mxu1 %v1676_v9  ;;  %1549 = vmatpush3.bf16.msra.mxu0 %v1687_v21 }
  0x62   :  { %1472 = vmatprep.subr.bf16.mxu1 %v1677_v10  ;;  %1550 = vmatprep.subr.bf16.mxu0 %v1927_v19 }
  0x65   :  { %1473 = vmatpush3.bf16.msra.mxu1 %v1678_v11  ;;  %1551 = vmatpush3.bf16.msra.mxu0 %v1688_v22 }
  0x66   :  { %1474 = vmatprep.subr.bf16.mxu1 %v1679_v12  ;;  %1552 = vmatprep.subr.bf16.mxu0 %v1927_v19 }
  0x69   :  { %1475 = vmatpush3.bf16.msra.mxu1 %v1680_v13  ;;  %1553 = vmatpush3.bf16.msra.mxu0 %v1689_v23 }
  0x6a   :  { %1476 = vmatprep.subr.bf16.mxu1 %v1681_v14  ;;  %1554 = vmatprep.subr.bf16.mxu0 %v1927_v19 }
  0x6d   :  { %1477 = vmatpush3.bf16.msra.mxu1 %v1682_v15  ;;  %1555 = vmatpush3.bf16.msra.mxu0 %v1690_v24 }
  0x6e   :  { %1478 = vmatprep.subr.bf16.mxu1 %v1683_v16  ;;  %1556 = vmatprep.subr.bf16.mxu0 %v1927_v19 }
  0x71   :  { %1479 = vmatpush3.bf16.msra.mxu1 %v1684_v17 }
  0xd0   :  { %v258_v26 = vpop.permute.xlu0 %257 }
  0xd1   :  { %v2087_v27 = vmul.f32 %v1370_v25, %v258_v26 }
  0xd3   :  { %v268_v28 = vand.u32 2139095040, %v2087_v27  ;;  %v265_v29 = vand.u32 2147483647, %v2087_v27  ;;  %vm267_vm7 = vcmp.lt.s32.totalorder %v2087_v27, 0  ;;  %vm357_vm15 = vweird.f32 %v2087_v27 }
  0xd5   :  { %v269_v30 = vshrl.u32 %v268_v28, 23  ;;  %v272_v32 = vand.u32 8388607, %v265_v29  ;;  %vm266_vm8 = vcmp.le.f32.partialorder %v265_v29, 0.7853982 }
  0xd7   :  { %v1371_v31 = vadd.s32 4294967169, %v269_v30  ;;  %v273_v35 = vor.u32 8388608, %v272_v32 }
  0xd9   :  { %v275_v33 = vadd.s32 1, %v1371_v31  ;;  %v313_v43 = vshll.u32 %v273_v35, 8 }
  0xdb   :  { %vm276_vm0 = vcmp.gt.s32.totalorder %v275_v33, 0 }
  0xdc   :  { %v277_v34 = vsel %vm276_vm0, %v275_v33, 0  ;;  %vm1934_vm0 = vmmov 0  }
  0xdd   :  { %v279_v36 = vand.u32 31, %v277_v34  ;;  %v278_v37 = vshrl.u32 %v277_v34, 5  ;;  %1560 = vmatprep.mubr.msk.bf16.mxu0 %vm1934_vm0, %v1927_v19 }
  0xdf   :  { %v280_v38 = vsub.s32 32, %v279_v36  ;;  %v291_v40 = vshll.u32 %v1928_v39, %v279_v36  ;;  %v294_v42 = vshll.u32 %v1929_v41, %v279_v36  ;;  %v282_v48 = vshll.u32 %v1931_v47, %v279_v36 }
  0xe0   :  { %v285_v51 = vshll.u32 %v1932_v49, %v279_v36  ;;  %v288_v54 = vshll.u32 %v1933_v52, %v279_v36  ;;  %vm300_vm1 = vcmp.lt.s32.totalorder %v278_v37, 4  ;;  %vm297_vm2 = vcmp.lt.s32.totalorder %v278_v37, 1 }
  0xe1   :  { %v292_v44 = vshrl.u32 %v1929_v41, %v280_v38  ;;  %v295_v46 = vshrl.u32 %v1930_v45, %v280_v38  ;;  %v283_v50 = vshrl.u32 %v1932_v49, %v280_v38  ;;  %v286_v53 = vshrl.u32 %v1933_v52, %v280_v38 }
  0xe2   :  { %v289_v55 = vshrl.u32 %v1928_v39, %v280_v38  ;;  %v281_v59 = vshrl.u32 %v1931_v47, %v280_v38  ;;  %vm298_vm3 = vcmp.lt.s32.totalorder %v278_v37, 2  ;;  %vm299_vm4 = vcmp.lt.s32.totalorder %v278_v37, 3 }
  0xe3   :  { %v293_v56 = vor.u32 %v292_v44, %v291_v40  ;;  %v296_v57 = vor.u32 %v295_v46, %v294_v42  ;;  %v284_v58 = vor.u32 %v283_v50, %v282_v48  ;;  %v287_v60 = vor.u32 %v286_v53, %v285_v51 }
  0xe4   :  { %v290_v61 = vor.u32 %v289_v55, %v288_v54 }
  0xe5   :  { %v306_v62 = vsel %vm300_vm1, %v293_v56, 920167782  ;;  %v310_v63 = vsel %vm300_vm1, %v296_v57, 1326507024  ;;  %v305_v1 = vsel %vm297_vm2, %v284_v58, %v287_v60  ;;  %v301_v4 = vsel %vm297_vm2, %v281_v59, %v284_v58 }
  0xe6   :  { %v302_v0 = vsel %vm300_vm1, %v290_v61, 2102212464  ;;  %v307_v2 = vsel %vm299_vm4, %v290_v61, %v306_v62  ;;  %v309_v3 = vsel %vm297_vm2, %v287_v60, %v290_v61  ;;  %v311_v7 = vsel %vm299_vm4, %v293_v56, %v310_v63 }
  0xe7   :  { %v303_v5 = vsel %vm299_vm4, %v287_v60, %v302_v0  ;;  %v308_v6 = vsel %vm298_vm3, %v305_v1, %v307_v2  ;;  %v312_v8 = vsel %vm298_vm3, %v309_v3, %v311_v7  ;;  %v1691_v0 = vld [vmem:[#allocation2 + $0x8] sm:$0xff]   ;;  %v1692_v1 = vld [vmem:[#allocation2] sm:$0xff]   ;;  %v1693_v2 = vld [vmem:[#allocation4 + $0x38] sm:$0xff]  }
  0xe8   :  { %v2093_v9 = vmul.u32.u64.low %v313_v43, %v308_v6  ;;  %v2094_v10 = vmul.u32.u64.high %v313_v43, %v308_v6, %v2093_v9  ;;  %v2096_v11 = vmul.u32.u64.low %v313_v43, %v312_v8  ;;  %v2097_v12 = vmul.u32.u64.high %v313_v43, %v312_v8, %v2096_v11  ;;  %1557 = vmatpush3.bf16.msra.mxu0 %v1691_v0  ;;  %v1694_v3 = vld [vmem:[#allocation4 + $0x30] sm:$0xff]   ;;  %v1697_v6 = vld [vmem:[#allocation4 + $0x18] sm:$0xff]   ;;  %v1699_v8 = vld [vmem:[#allocation4 + $0x8] sm:$0xff]  }
  0xe9   :  { %v304_v13 = vsel %vm298_vm3, %v301_v4, %v303_v5  ;;  %1558 = vmatprep.subr.bf16.mxu0 %v1927_v19  ;;  %v1695_v4 = vld [vmem:[#allocation4 + $0x28] sm:$0xff]   ;;  %v1696_v5 = vld [vmem:[#allocation4 + $0x20] sm:$0xff]   ;;  %v1698_v7 = vld [vmem:[#allocation4 + $0x10] sm:$0xff]  }
  0xea   :  { %v323_v14 = vadd.s32 1, %v2094_v10  ;;  %v320_v15 = vmul.u32 %v313_v43, %v304_v13  ;;  %vm322_vm5 = vc.u32 %v2097_v12, %v2093_v9  ;;  %v321_v30 = vadd.s32 %v2093_v9, %v2097_v12  ;;  %v1700_v9 = vld [vmem:[#allocation4] sm:$0xff]   ;;  %v1702_v11 = vld [vmem:[#allocation6 + $0x38] sm:$0xff]   ;;  %v1703_v12 = vld [vmem:[#allocation6 + $0x70] sm:$0xff]  }
  0xeb   :  { %v1704_v13 = vld [vmem:[#allocation6 + $0x30] sm:$0xff]   ;;  %v1717_v0 = vld [vmem:[#allocation7 + $0x38] sm:$0xff]  }
  0xec   :  { %v324_v16 = vsel %vm322_vm5, %v323_v14, %v2094_v10  ;;  %1559 = vmatpush3.bf16.msra.mxu0 %v1692_v1  ;;  %v1701_v10 = vld [vmem:[#allocation6 + $0x78] sm:$0xff]   ;;  %v1705_v14 = vld [vmem:[#allocation6 + $0x68] sm:$0xff]   ;;  %v1718_v1 = vld [vmem:[#allocation7 + $0x30] sm:$0xff]  }
  0xed   :  { %v325_v17 = vadd.s32 %v324_v16, %v320_v15  ;;  %1564 = vmatprep.subr.bf16.mxu0 %v1927_v19  ;;  %1495 = vmatprep.subr.bf16.mxu1 %v1701_v10  ;;  %v1706_v15 = vld [vmem:[#allocation6 + $0x28] sm:$0xff]   ;;  %v1707_v16 = vld [vmem:[#allocation6 + $0x60] sm:$0xff]  }
  0xef   :  { %v326_v18 = vadd.s32 536870912, %v325_v17 }
  0xf1   :  { %v327_v20 = vshrl.u32 %v326_v18, 30  ;;  %v1709_v18 = vld [vmem:[#allocation6 + $0x58] sm:$0xff]  }
  0xf3   :  { %v328_v21 = vshll.u32 %v327_v20, 30  ;;  %v351_v43 = vsub.s32 4, %v327_v20 }
  0xf5   :  { %v329_v22 = vsub.s32 %v325_v17, %v328_v21  ;;  %v352_v46 = vsel %vm267_vm7, %v351_v43, %v327_v20  ;;  %v1708_v17 = vld [vmem:[#allocation6 + $0x20] sm:$0xff]   ;;  %v1710_v20 = vld [vmem:[#allocation6 + $0x18] sm:$0xff]   ;;  %v1711_v21 = vld [vmem:[#allocation6 + $0x50] sm:$0xff]  }
  0xf6   :  { %v354_v47 = vsel %vm266_vm8, 0, %v352_v46  ;;  %v1716_v46 = vld [vmem:[#allocation6] sm:$0xff]  }
  0xf7   :  { %v331_v23 = vsub.s32 0, %v329_v22  ;;  %v358_v48 = vadd.s32 3, %v354_v47  ;;  %v462_v50 = vand.u32 3, %v354_v47  ;;  %v1361_v47 = vld [vmem:[#allocation12 + $0x1] ss:$0 sm:$0xff] }
  0xf9   :  { %v1372_v24 = vmin.u32 %v331_v23, %v329_v22  ;;  %v359_v49 = vand.u32 3, %v358_v48  ;;  %vm467_vm10 = vcmp.eq.s32.totalorder %v462_v50, 2  ;;  %vm464_vm12 = vcmp.eq.s32.totalorder %v462_v50, 0  ;;  %v1713_v23 = vld [vmem:[#allocation6 + $0x48] sm:$0xff]   ;;  %v1396_v48 = vld [vmem:[#allocation12 + $0x3] ss:$0 sm:$0xff] }
  0xfa   :  { %vm463_vm14 = vcmp.lt.s32.totalorder %v462_v50, 2 }
  0xfb   :  { %v333_v25 = vclz %v1372_v24  ;;  %vm364_vm9 = vcmp.eq.s32.totalorder %v359_v49, 2  ;;  %vm361_vm11 = vcmp.eq.s32.totalorder %v359_v49, 0  ;;  %vm360_vm13 = vcmp.lt.s32.totalorder %v359_v49, 2  ;;  %v1714_v24 = vld [vmem:[#allocation6 + $0x8] sm:$0xff]  }
  0xfd   :  { %v1373_v26 = vadd.s32 4294967294, %v333_v25 }
  0xff   :  { %vm1374_vm6 = vcmp.lt.s32.totalorder %v1373_v26, 0 }
 0x100   :  { %v336_v28 = vsel %vm1374_vm6, 0, %v1373_v26  ;;  %v1379_v26 = vld [vmem:[#allocation12 + $0x2] ss:$0 sm:$0xff] }
 0x101   :  { %v337_v31 = vsub.s32 32, %v336_v28  ;;  %v341_v32 = vsub.s32 4294967266, %v336_v28  ;;  %v338_v33 = vshll.u32 %v329_v22, %v336_v28  ;;  %v1712_v22 = vld [vmem:[#allocation6 + $0x10] sm:$0xff]  }
 0x103   :  { %v339_v34 = vshrl.u32 %v321_v30, %v337_v31  ;;  %v342_v35 = vadd.s32 127, %v341_v32 }
 0x105   :  { %v340_v36 = vor.u32 %v339_v34, %v338_v33  ;;  %v343_v37 = vshll.u32 %v342_v35, 23 }
 0x107   :  { %v344_v38 = vor.u32 4788187, %v343_v37  ;;  %v347_v40 = vcvt.s32.f32 %v340_v36 }
 0x109   :  { %v345_v39 = vand.u32 2147483647, %v344_v38 }
 0x10b   :  { %v348_v41 = vmul.f32 %v347_v40, %v345_v39 }
 0x10d   :  { %v349_v42 = vxor.u32 2147483648, %v348_v41 }
 0x10f   :  { %v350_v44 = vsel %vm267_vm7, %v349_v42, %v348_v41 }
 0x110   :  { %v353_v45 = vsel %vm266_vm8, %v2087_v27, %v350_v44  ;;  %v145_v27 = vld [vmem:[%s2157_s0] sm:$0xf] }
 0x111   :  { %1741 = vcosq.f32 %v353_v45  ;;  %1561 = vmatmul.mubr.bf16.vlgmr.msra.gmra.mxu0 %v145_v27  ;;  %v1719_v27 = vld [vmem:[#allocation7 + $0x28] sm:$0xff]  }
 0x112   :  { %1743 = vsinq.f32 %v353_v45  ;;  %1580 = vmatprep.mubr.msk.bf16.mxu0 %vm1934_vm0, %v1927_v19  ;;  %1565 = vmatpush3.bf16.msra.mxu0 %v1693_v2  ;;  %v1715_v45 = vld [vmem:[#allocation6 + $0x40] sm:$0xff]  }
 0x113   :  { %1566 = vmatprep.subr.bf16.mxu0 %v1927_v19  ;;  %v1720_v2 = vld [vmem:[#allocation7 + $0x20] sm:$0xff]  }
 0x116   :  { %1567 = vmatpush3.bf16.msra.mxu0 %v1694_v3  ;;  %v1721_v3 = vld [vmem:[#allocation7 + $0x18] sm:$0xff]  }
 0x117   :  { %1568 = vmatprep.subr.bf16.mxu0 %v1927_v19 }
 0x11a   :  { %1569 = vmatpush3.bf16.msra.mxu0 %v1695_v4  ;;  %v1722_v4 = vld [vmem:[#allocation7 + $0x10] sm:$0xff]  }
 0x11b   :  { %1570 = vmatprep.subr.bf16.mxu0 %v1927_v19 }
 0x11e   :  { %v1742_v51 = vpop.eup %1741  ;;  %1571 = vmatpush3.bf16.msra.mxu0 %v1696_v5  ;;  %v1723_v5 = vld [vmem:[#allocation7 + $0x8] sm:$0xff]  }
 0x11f   :  { %v1744_v52 = vpop.eup %1743  ;;  %v365_v53 = vxor.u32 2147483648, %v1742_v51  ;;  %1572 = vmatprep.subr.bf16.mxu0 %v1927_v19 }
 0x120   :  { %v362_v54 = vxor.u32 2147483648, %v1744_v52 }
 0x121   :  { %v366_v55 = vsel %vm364_vm9, %v365_v53, %v1744_v52  ;;  %v469_v29 = vsel %vm467_vm10, %v365_v53, %v1744_v52 }
 0x122   :  { %v363_v56 = vsel %vm361_vm11, %v1742_v51, %v362_v54  ;;  %v466_v57 = vsel %vm464_vm12, %v1742_v51, %v362_v54  ;;  %1573 = vmatpush3.bf16.msra.mxu0 %v1697_v6  ;;  %v1724_v6 = vld [vmem:[#allocation7] sm:$0xff]  }
 0x123   :  { %v367_v58 = vsel %vm360_vm13, %v363_v56, %v366_v55  ;;  %v470_v59 = vsel %vm463_vm14, %v466_v57, %v469_v29  ;;  %1574 = vmatprep.subr.bf16.mxu0 %v1927_v19  ;;  %v1405_v57 = vld [vmem:[#allocation12 + $0x4] ss:$0 sm:$0xff] }
 0x124   :  { %v368_v60 = vsel %vm357_vm15, nan, %v367_v58  ;;  %v471_v61 = vsel %vm357_vm15, nan, %v470_v59 }
 0x125   :  { %v472_v62 = vpack.c.bf16 %v368_v60, %v368_v60  ;;  %v473_v63 = vpack.c.bf16 %v471_v61, %v471_v61 }
 0x126   :  { %1575 = vmatpush3.bf16.msra.mxu0 %v1698_v7 }
 0x127   :  { %638 = vmatprep.mubr.bf16.mxu1 %v473_v63  ;;  %1576 = vmatprep.subr.bf16.mxu0 %v1927_v19 }
 0x128   :  { %639 = vmatmul.mubr.bf16.vlgmr.msra.gmra.mxu1 %v472_v62 }
 0x129   :  { %1496 = vmatpush3.bf16.msra.mxu1 %v1702_v11 }
 0x12a   :  { %1577 = vmatpush3.bf16.msra.mxu0 %v1699_v8  ;;  %1497 = vmatprep.subr.bf16.mxu1 %v1703_v12 }
 0x12b   :  { %1578 = vmatprep.subr.bf16.mxu0 %v1927_v19 }
 0x12d   :  { %1498 = vmatpush3.bf16.msra.mxu1 %v1704_v13 }
 0x12e   :  { %1579 = vmatpush3.bf16.msra.mxu0 %v1700_v9  ;;  %1499 = vmatprep.subr.bf16.mxu1 %v1705_v14 }
 0x12f   :  { %1584 = vmatprep.subr.bf16.mxu0 %v1927_v19 }
 0x131   :  { %1500 = vmatpush3.bf16.msra.mxu1 %v1706_v15 }
 0x132   :  { %1501 = vmatprep.subr.bf16.mxu1 %v1707_v16 }
 0x135   :  { %1502 = vmatpush3.bf16.msra.mxu1 %v1708_v17  ;;  %v1422_v17 = vld [vmem:[#allocation12 + $0x5] ss:$0 sm:$0xff] }
 0x136   :  { %1503 = vmatprep.subr.bf16.mxu1 %v1709_v18 }
 0x139   :  { %1504 = vmatpush3.bf16.msra.mxu1 %v1710_v20  ;;  %v1423_v20 = vld [vmem:[#allocation12 + $0x6] ss:$0 sm:$0xff] }
 0x13a   :  { %1505 = vmatprep.subr.bf16.mxu1 %v1711_v21 }
 0x13d   :  { %1506 = vmatpush3.bf16.msra.mxu1 %v1712_v22 }
 0x13e   :  { %1507 = vmatprep.subr.bf16.mxu1 %v1713_v23 }
 0x141   :  { %1508 = vmatpush3.bf16.msra.mxu1 %v1714_v24 }
 0x142   :  { %1509 = vmatprep.subr.bf16.mxu1 %v1715_v45  ;;  %v1731_v45 = vld [vmem:[#allocation9 + $0x8] sm:$0xff]  }
 0x145   :  { %1510 = vmatpush3.bf16.msra.mxu1 %v1716_v46  ;;  %v1732_v46 = vld [vmem:[#allocation9] sm:$0xff]  }
 0x146   :  { %1604 = vmatprep.subr.bf16.mxu1 %v1927_v19 }
 0x1d1   :  { %v248_v41 = vpop.f32.mrf.mxu0 }
 0x1d2   :  { %v249_v49 = vadd.f32 %v1361_v47, %v248_v41  ;;  %v1727_v41 = vld [vmem:[#allocation9 + $0x28] sm:$0xff]  }
 0x1d3   :  { %v1562_v42 = vpop.f32.mrf.mxu0 }
 0x1d4   :  { %v761_v54 = vpack.c.bf16 %v249_v49, %v249_v49  ;;  %v1728_v42 = vld [vmem:[#allocation9 + $0x20] sm:$0xff]  }
 0x1d5   :  { %v251_v43 = vpop.f32.mrf.mxu0 }
 0x1d6   :  { %v1729_v43 = vld [vmem:[#allocation9 + $0x18] sm:$0xff]  }
 0x1d7   :  { %v1563_v44 = vpop.f32.mrf.mxu0 }
 0x1d8   :  { %v1730_v44 = vld [vmem:[#allocation9 + $0x10] sm:$0xff]  }
 0x1e8   :  { %v1480_v25 = vpop.f32.mrf.mxu1 }
 0x1ea   :  { %v1481_v28 = vpop.f32.mrf.mxu1 }
 0x1eb   :  { %v1482_v30 = vadd.f32 %v1481_v28, %v1480_v25 }
 0x1ec   :  { %v1483_v31 = vpop.f32.mrf.mxu1 }
 0x1ed   :  { %v641_v32 = vadd.f32 %v1482_v30, %v1379_v26 }
 0x1ee   :  { %v1484_v33 = vpop.f32.mrf.mxu1 }
 0x1ef   :  { %v646_v34 = vsub.f32 0.0, %v641_v32 }
 0x1f1   :  { %v647_v35 = vmul.f32 1.442695, %v646_v34 }
 0x1f3   :  { %1745 = vpow2.f32 %v647_v35 }
 0x200   :  { %v1746_v36 = vpop.eup %1745 }
 0x201   :  { %v649_v37 = vadd.f32 1.0, %v1746_v36 }
 0x203   :  { %1747 = vrcp.f32 %v649_v37 }
 0x210   :  { %v1748_v38 = vpop.eup %1747 }
 0x211   :  { %v651_v39 = vmul.f32 %v1748_v38, %v641_v32  ;;  %v1424_v32 = vld [vmem:[#allocation12 + $0x7] ss:$0 sm:$0xff] }
 0x213   :  { %v652_v40 = vpack.c.bf16 %v651_v39, %v651_v39  ;;  %v1725_v39 = vld [vmem:[#allocation9 + $0x38] sm:$0xff]  }
 0x215   :  { %1581 = vmatmul.mubr.bf16.vlgmr.msra.gmra.mxu0 %v652_v40  ;;  %v1726_v40 = vld [vmem:[#allocation9 + $0x30] sm:$0xff]  }
 0x216   :  { %1600 = vmatprep.mubr.msk.bf16.mxu0 %vm1934_vm0, %v1927_v19  ;;  %1585 = vmatpush3.bf16.msra.mxu0 %v1717_v0 }
 0x217   :  { %1586 = vmatprep.subr.bf16.mxu0 %v1927_v19 }
 0x21a   :  { %1587 = vmatpush3.bf16.msra.mxu0 %v1718_v1 }
 0x21b   :  { %1588 = vmatprep.subr.bf16.mxu0 %v1927_v19 }
 0x21e   :  { %1589 = vmatpush3.bf16.msra.mxu0 %v1719_v27 }
 0x21f   :  { %1590 = vmatprep.subr.bf16.mxu0 %v1927_v19 }
 0x222   :  { %1591 = vmatpush3.bf16.msra.mxu0 %v1720_v2 }
 0x223   :  { %1592 = vmatprep.subr.bf16.mxu0 %v1927_v19 }
 0x226   :  { %1593 = vmatpush3.bf16.msra.mxu0 %v1721_v3  ;;  %v1435_v3 = vld [vmem:[#allocation12 + $0xa] ss:$0 sm:$0xff] }
 0x227   :  { %1594 = vmatprep.subr.bf16.mxu0 %v1927_v19 }
 0x22a   :  { %1595 = vmatpush3.bf16.msra.mxu0 %v1722_v4 }
 0x22b   :  { %1596 = vmatprep.subr.bf16.mxu0 %v1927_v19 }
 0x22e   :  { %1597 = vmatpush3.bf16.msra.mxu0 %v1723_v5 }
 0x22f   :  { %1598 = vmatprep.subr.bf16.mxu0 %v1927_v19 }
 0x232   :  { %1599 = vmatpush3.bf16.msra.mxu0 %v1724_v6 }
 0x233   :  { %1624 = vmatprep.subr.bf16.mxu0 %v1927_v19 }
 0x2d5   :  { %v755_v50 = vpop.f32.mrf.mxu0 }
 0x2d6   :  { %v756_v51 = vadd.f32 %v1396_v48, %v755_v50 }
 0x2d7   :  { %v1582_v52 = vpop.f32.mrf.mxu0 }
 0x2d8   :  { %v762_v53 = vpack.c.bf16 %v756_v51, %v756_v51 }
 0x2d9   :  { %v758_v55 = vpop.f32.mrf.mxu0 }
 0x2da   :  { %927 = vmatprep.mubr.bf16.mxu1 %v762_v53 }
 0x2db   :  { %v1583_v29 = vpop.f32.mrf.mxu0  ;;  %928 = vmatmul.mubr.bf16.vlgmr.msra.gmra.mxu1 %v761_v54 }
 0x2dc   :  { %1620 = vmatprep.mubr.msk.bf16.mxu1 %vm1934_vm0, %v1927_v19  ;;  %1605 = vmatpush3.bf16.msra.mxu1 %v1725_v39 }
 0x2dd   :  { %1606 = vmatprep.subr.bf16.mxu1 %v1927_v19 }
 0x2e0   :  { %1607 = vmatpush3.bf16.msra.mxu1 %v1726_v40 }
 0x2e1   :  { %1608 = vmatprep.subr.bf16.mxu1 %v1927_v19 }
 0x2e4   :  { %1609 = vmatpush3.bf16.msra.mxu1 %v1727_v41 }
 0x2e5   :  { %1610 = vmatprep.subr.bf16.mxu1 %v1927_v19 }
 0x2e8   :  { %1611 = vmatpush3.bf16.msra.mxu1 %v1728_v42  ;;  %v1446_v42 = vld [vmem:[#allocation12 + $0xd] ss:$0 sm:$0xff] }
 0x2e9   :  { %1612 = vmatprep.subr.bf16.mxu1 %v1927_v19 }
 0x2ec   :  { %1613 = vmatpush3.bf16.msra.mxu1 %v1729_v43 }
 0x2ed   :  { %1614 = vmatprep.subr.bf16.mxu1 %v1927_v19 }
 0x2f0   :  { %1615 = vmatpush3.bf16.msra.mxu1 %v1730_v44 }
 0x2f1   :  { %1616 = vmatprep.subr.bf16.mxu1 %v1927_v19 }
 0x2f4   :  { %1617 = vmatpush3.bf16.msra.mxu1 %v1731_v45 }
 0x2f5   :  { %1618 = vmatprep.subr.bf16.mxu1 %v1927_v19 }
 0x2f8   :  { %1619 = vmatpush3.bf16.msra.mxu1 %v1732_v46 }
 0x39b   :  { %v1511_v56 = vpop.f32.mrf.mxu1 }
 0x39d   :  { %v1512_v58 = vpop.f32.mrf.mxu1 }
 0x39e   :  { %v1513_v59 = vadd.f32 %v1512_v58, %v1511_v56  ;;  %v1433_v56 = vld [vmem:[#allocation12 + $0x8] ss:$0 sm:$0xff]  ;;  %v1434_v58 = vld [vmem:[#allocation12 + $0x9] ss:$0 sm:$0xff] }
 0x39f   :  { %v1514_v60 = vpop.f32.mrf.mxu1 }
 0x3a0   :  { %v930_v61 = vadd.f32 %v1513_v59, %v1405_v57 }
 0x3a1   :  { %v1515_v62 = vpop.f32.mrf.mxu1 }
 0x3a2   :  { %935 = vadd.xlane.f32.xlu0 %v930_v61  ;;  %v938_v63 = vmul.f32 %v930_v61, %v930_v61 }
 0x3a4   :  { %939 = vadd.xlane.f32.xlu1 %v938_v63 }
 0x42b   :  { %v936_v7 = vpop.xlane.xlu0 %935 }
 0x42c   :  { %v937_v8 = vmul.f32 0.03125, %v936_v7 }
 0x42d   :  { %v940_v9 = vpop.xlane.xlu1 %939 }
 0x42e   :  { %v942_v10 = vmul.f32 %v937_v8, %v937_v8  ;;  %v941_v11 = vmul.f32 0.03125, %v940_v9  ;;  %v945_v15 = vsub.f32 %v930_v61, %v937_v8 }
 0x430   :  { %v943_v12 = vsub.f32 %v941_v11, %v942_v10  ;;  %v1733_v10 = vld [vmem:[#allocation10 + $0x38] sm:$0xff]   ;;  %v1734_v11 = vld [vmem:[#allocation10 + $0x30] sm:$0xff]  }
 0x432   :  { %v944_v13 = vmax.f32 %v943_v12, 0.0  ;;  %v1735_v12 = vld [vmem:[#allocation10 + $0x28] sm:$0xff]  }
 0x434   :  { %v946_v14 = vadd.f32 1e-05, %v944_v13  ;;  %v1736_v13 = vld [vmem:[#allocation10 + $0x20] sm:$0xff]  }
 0x436   :  { %1749 = vrsqrt.f32 %v946_v14  ;;  %v1737_v14 = vld [vmem:[#allocation10 + $0x18] sm:$0xff]  }
 0x443   :  { %v1750_v16 = vpop.eup %1749 }
 0x444   :  { %v948_v18 = vmul.f32 %v1750_v16, %v945_v15  ;;  %v1738_v15 = vld [vmem:[#allocation10 + $0x10] sm:$0xff]   ;;  %v1739_v16 = vld [vmem:[#allocation10 + $0x8] sm:$0xff]  }
 0x446   :  { %v953_v21 = vmul.f32 %v1422_v17, %v948_v18  ;;  %v1740_v17 = vld [vmem:[#allocation10] sm:$0xff]  }
 0x448   :  { %v958_v22 = vadd.f32 %v1423_v20, %v953_v21 }
 0x44a   :  { %v959_v23 = vsub.f32 0.0, %v958_v22 }
 0x44c   :  { %v960_v24 = vmul.f32 1.442695, %v959_v23 }
 0x44e   :  { %1751 = vpow2.f32 %v960_v24 }
 0x45b   :  { %v1752_v25 = vpop.eup %1751 }
 0x45c   :  { %v962_v26 = vadd.f32 1.0, %v1752_v25 }
 0x45e   :  { %1753 = vrcp.f32 %v962_v26 }
 0x46b   :  { %v1754_v28 = vpop.eup %1753 }
 0x46c   :  { %v964_v30 = vmul.f32 %v1754_v28, %v958_v22 }
 0x46e   :  { %v965_v31 = vpack.c.bf16 %v964_v30, %v964_v30 }
 0x470   :  { %1601 = vmatmul.mubr.bf16.vlgmr.msra.gmra.mxu0 %v965_v31  ;;  %v1444_v31 = vld [vmem:[#allocation12 + $0xb] ss:$0 sm:$0xff] }
 0x471   :  { %1640 = vmatprep.mubr.msk.bf16.mxu0 %vm1934_vm0, %v1927_v19  ;;  %1625 = vmatpush3.bf16.msra.mxu0 %v1733_v10 }
 0x472   :  { %1626 = vmatprep.subr.bf16.mxu0 %v1927_v19 }
 0x475   :  { %1627 = vmatpush3.bf16.msra.mxu0 %v1734_v11 }
 0x476   :  { %1628 = vmatprep.subr.bf16.mxu0 %v1927_v19 }
 0x479   :  { %1629 = vmatpush3.bf16.msra.mxu0 %v1735_v12 }
 0x47a   :  { %1630 = vmatprep.subr.bf16.mxu0 %v1927_v19 }
 0x47d   :  { %1631 = vmatpush3.bf16.msra.mxu0 %v1736_v13 }
 0x47e   :  { %1632 = vmatprep.subr.bf16.mxu0 %v1927_v19 }
 0x481   :  { %1633 = vmatpush3.bf16.msra.mxu0 %v1737_v14 }
 0x482   :  { %1634 = vmatprep.subr.bf16.mxu0 %v1927_v19 }
 0x485   :  { %1635 = vmatpush3.bf16.msra.mxu0 %v1738_v15 }
 0x486   :  { %1636 = vmatprep.subr.bf16.mxu0 %v1927_v19 }
 0x489   :  { %1637 = vmatpush3.bf16.msra.mxu0 %v1739_v16 }
 0x48a   :  { %1638 = vmatprep.subr.bf16.mxu0 %v1927_v19 }
 0x48d   :  { %1639 = vmatpush3.bf16.msra.mxu0 %v1740_v17 }
 0x530   :  { %v1068_v33 = vpop.f32.mrf.mxu0 }
 0x531   :  { %v1069_v34 = vadd.f32 %v1424_v32, %v1068_v33  ;;  %v1445_v33 = vld [vmem:[#allocation12 + $0xc] ss:$0 sm:$0xff] }
 0x532   :  { %v1602_v35 = vpop.f32.mrf.mxu0 }
 0x533   :  { %1074 = vadd.xlane.f32.xlu1 %v1069_v34  ;;  %v1077_v37 = vmul.f32 %v1069_v34, %v1069_v34 }
 0x534   :  { %v1071_v36 = vpop.f32.mrf.mxu0 }
 0x536   :  { %v1603_v38 = vpop.f32.mrf.mxu0 }
 0x537   :  { %1078 = vadd.xlane.f32.xlu1 %v1077_v37 }
 0x5bc   :  { %v1075_v47 = vpop.xlane.xlu1 %1074 }
 0x5bd   :  { %v1076_v48 = vmul.f32 0.03125, %v1075_v47 }
 0x5bf   :  { %v1081_v50 = vmul.f32 %v1076_v48, %v1076_v48  ;;  %v1084_v55 = vsub.f32 %v1069_v34, %v1076_v48 }
 0x5c0   :  { %v1079_v49 = vpop.xlane.xlu1 %1078 }
 0x5c1   :  { %v1080_v51 = vmul.f32 0.03125, %v1079_v49 }
 0x5c3   :  { %v1082_v52 = vsub.f32 %v1080_v51, %v1081_v50 }
 0x5c5   :  { %v1083_v53 = vmax.f32 %v1082_v52, 0.0 }
 0x5c7   :  { %v1085_v54 = vadd.f32 1e-05, %v1083_v53 }
 0x5c9   :  { %1755 = vrsqrt.f32 %v1085_v54 }
 0x5d6   :  { %v1756_v29 = vpop.eup %1755 }
 0x5d7   :  { %v1087_v57 = vmul.f32 %v1756_v29, %v1084_v55 }
 0x5d9   :  { %v1092_v59 = vmul.f32 %v1433_v56, %v1087_v57 }
 0x5db   :  { %v1097_v60 = vadd.f32 %v1434_v58, %v1092_v59 }
 0x5dd   :  { %v1098_v61 = vsub.f32 0.0, %v1097_v60 }
 0x5df   :  { %v1099_v62 = vmul.f32 1.442695, %v1098_v61 }
 0x5e1   :  { %1757 = vpow2.f32 %v1099_v62 }
 0x5ee   :  { %v1758_v63 = vpop.eup %1757 }
 0x5ef   :  { %v1101_v0 = vadd.f32 1.0, %v1758_v63 }
 0x5f1   :  { %1759 = vrcp.f32 %v1101_v0 }
 0x5fe   :  { %v1760_v1 = vpop.eup %1759 }
 0x5ff   :  { %v1103_v27 = vmul.f32 %v1760_v1, %v1097_v60 }
 0x601   :  { %v1104_v2 = vpack.c.bf16 %v1103_v27, %v1103_v27 }
 0x603   :  { %1621 = vmatmul.mubr.bf16.vlgmr.msra.gmra.mxu1 %v1104_v2 }
 0x6c3   :  { %v1207_v4 = vpop.f32.mrf.mxu1 }
 0x6c4   :  { %v1208_v5 = vadd.f32 %v1435_v3, %v1207_v4 }
 0x6c5   :  { %v1622_v6 = vpop.f32.mrf.mxu1 }
 0x6c6   :  { %1213 = vadd.xlane.f32.xlu1 %v1208_v5  ;;  %v1216_v8 = vmul.f32 %v1208_v5, %v1208_v5 }
 0x6c7   :  { %v1210_v7 = vpop.f32.mrf.mxu1 }
 0x6c9   :  { %v1623_v9 = vpop.f32.mrf.mxu1 }
 0x6ca   :  { %1217 = vadd.xlane.f32.xlu1 %v1216_v8 }
 0x74f   :  { %v1214_v18 = vpop.xlane.xlu1 %1213 }
 0x750   :  { %v1215_v20 = vmul.f32 0.03125, %v1214_v18 }
 0x752   :  { %v1220_v22 = vmul.f32 %v1215_v20, %v1215_v20  ;;  %v1223_v28 = vsub.f32 %v1208_v5, %v1215_v20 }
 0x753   :  { %v1218_v21 = vpop.xlane.xlu1 %1217 }
 0x754   :  { %v1219_v23 = vmul.f32 0.03125, %v1218_v21 }
 0x756   :  { %v1221_v24 = vsub.f32 %v1219_v23, %v1220_v22 }
 0x758   :  { %v1222_v25 = vmax.f32 %v1221_v24, 0.0 }
 0x75a   :  { %v1224_v26 = vadd.f32 1e-05, %v1222_v25 }
 0x75c   :  { %1761 = vrsqrt.f32 %v1224_v26 }
 0x769   :  { %v1762_v30 = vpop.eup %1761 }
 0x76a   :  { %v1226_v32 = vmul.f32 %v1762_v30, %v1223_v28 }
 0x76c   :  { %v1231_v34 = vmul.f32 %v1444_v31, %v1226_v32 }
 0x76e   :  { %v1236_v35 = vadd.f32 %v1445_v33, %v1231_v34 }
 0x770   :  { %v1237_v36 = vsub.f32 0.0, %v1236_v35 }
 0x772   :  { %v1238_v37 = vmul.f32 1.442695, %v1237_v36 }
 0x774   :  { %1763 = vpow2.f32 %v1238_v37 }
 0x781   :  { %v1764_v19 = vpop.eup %1763 }
 0x782   :  { %v1240_v38 = vadd.f32 1.0, %v1764_v19 }
 0x784   :  { %1765 = vrcp.f32 %v1240_v38 }
 0x791   :  { %v1766_v39 = vpop.eup %1765 }
 0x792   :  { %v1242_v40 = vmul.f32 %v1766_v39, %v1236_v35 }
 0x794   :  { %v1243_v41 = vpack.c.bf16 %v1242_v40, %v1242_v40 }
 0x796   :  { %1641 = vmatmul.mubr.bf16.vlgmr.msra.gmra.mxu0 %v1243_v41 }
 0x856   :  { %v1346_v43 = vpop.f32.mrf.mxu0 }
 0x857   :  { %v1347_v44 = vadd.f32 %v1446_v42, %v1346_v43 }
 0x858   :  { %v1642_v45 = vpop.f32.mrf.mxu0 }
 0x859   :  { %1352 = vst [vmem:[%s2167_s10] sm:$0xff] %v1347_v44 }
 0x85a   :  { %v1349_v46 = vpop.f32.mrf.mxu0 }
 0x85c   :  { %v1643_v47 = vpop.f32.mrf.mxu0 }
 0x85d   :  { %1357 = vsyncpa [#allocation3], 1 }
 0x85e   :  { %1358 = vsyncpa [#allocation5], 1 }
 0x85f   :  { %1359 = vsyncpa [#allocation8], 1 }
 0x860   :  { %1360 = vsyncpa [#allocation11], 1 }

</bundles_post_ra>
